<compile_context>
chip_gen: v5e
topology: v5e:2x2
jax: 0.10.0
libtpu: 0.0.40
codegen_flags: <defaults>
</compile_context>

<pallas_src>
import jax
import jax.numpy as jnp
from jax.experimental import pallas as pl
from jax.experimental.pallas import tpu as pltpu

# ----- model config (small, consistent with the module's __init__) -----
N_VOCAB = 50
EMBED = 32
NUM_FILTERS = 8
FILTER_SIZES = (2, 3, 4)
NUM_CLASSES = 5
PAD_IDX = 0
BATCH = 2
SEQ_LEN = 8

# ----- hardware-friendly padded sizes -----
K_MAX = max(FILTER_SIZES)          # 4 taps
V_PAD = 128                        # vocab padded -> lane-dense one-hot compare
B_PAD = 8                          # batch padded -> sublane-dense rows, unmasked stores
ROWS = B_PAD * SEQ_LEN             # 64 im2col rows (one 8-row sublane tile per batch row)
KE = K_MAX * EMBED                 # 128 = conv contraction depth (one MXU pass)
F3_PAD = 128                       # conv output lanes (3*8 = 24 used, rest zero)
C_PAD = 128                        # class lanes (5 used, rest zero)
MATMUL_DTYPE = jnp.bfloat16        # MXU operand dtype (f32 accumulation)


def textcnn_kernel(tok_enc_ref, table_ref, convw_ref, convb_ref,
                   fcw_ref, fcb_ref, out_ref):
    """one-hot+im2col matmul -> conv matmul + bias + relu + mask -> pool -> fc matmul.

    tok_enc_ref : [ROWS, K_MAX]        int32  dk-encoded im2col token ids
                                              (dk*V_PAD + tok; -1 = out of window)
    table_ref   : [K_MAX*V_PAD, KE]    bf16   block-diagonal embedding table
    convw_ref   : [KE, F3_PAD]         bf16   lane-stacked, tap-zero-padded conv weights
    convb_ref   : [1, F3_PAD]          f32    conv bias (padded lanes zero)
    fcw_ref     : [F3_PAD, C_PAD]      bf16   fc weight (padded rows/lanes zero)
    fcb_ref     : [1, C_PAD]           f32    fc bias (padded lanes zero)
    out_ref     : [B_PAD, C_PAD]       f32    logits
    """
    tok = tok_enc_ref[...]                                           # [ROWS, K_MAX]

    # --- fused embedding gather + im2col: one compare chain + ONE matmul ---
    lane = jax.lax.broadcasted_iota(jnp.int32, (ROWS, K_MAX * V_PAD), 1)
    hit = lane == tok[:, 0:1]
    for dk in range(1, K_MAX):                                       # static unroll (4)
        hit = jnp.logical_or(hit, lane == tok[:, dk:dk + 1])
    onehot = hit.astype(jnp.float32).astype(MATMUL_DTYPE)            # [ROWS, 512]
    slab = jnp.dot(onehot, table_ref[...],
                   preferred_element_type=jnp.float32)               # [ROWS, KE=128]

    # --- all filter sizes in ONE conv matmul (contraction depth exactly 128) ---
    act = jnp.dot(slab.astype(MATMUL_DTYPE), convw_ref[...],
                  preferred_element_type=jnp.float32)                # [ROWS, F3_PAD]
    act = jnp.maximum(act + convb_ref[...], 0.0)                     # bias + relu

    # --- tile-aligned max_pool1d: zero invalid positions (safe ONLY post-ReLU,
    #     since all valid values are >= 0), then one reduction over the seq axis ---
    act3 = act.reshape(B_PAD, SEQ_LEN, F3_PAD)
    t_idx = jax.lax.broadcasted_iota(jnp.int32, (B_PAD, SEQ_LEN, F3_PAD), 1)
    lane3 = jax.lax.broadcasted_iota(jnp.int32, (B_PAD, SEQ_LEN, F3_PAD), 2)
    t_max = jnp.full((B_PAD, SEQ_LEN, F3_PAD), -1, jnp.int32)
    for i, k in enumerate(FILTER_SIZES):                             # static unroll (3)
        grp = (lane3 >= i * NUM_FILTERS) & (lane3 < (i + 1) * NUM_FILTERS)
        t_max = jnp.where(grp, SEQ_LEN - k, t_max)
    act3 = jnp.where(t_idx <= t_max, act3, 0.0)
    pooled = jnp.max(act3, axis=1)                                   # [B_PAD, F3_PAD]

    # Dropout is identity in eval/inference mode.
    # TODO(synk): training-mode dropout (pltpu.prng_*) not implemented.

    # --- single fc matmul + bias; lane/sublane dense output (unmasked stores) ---
    logits = jnp.dot(pooled.astype(MATMUL_DTYPE), fcw_ref[...],
                     preferred_element_type=jnp.float32) + fcb_ref[...]
    out_ref[...] = logits.astype(out_ref.dtype)


def pack_tokens(tokens):
    """tokens [B, L] int32 -> dk-encoded im2col indices [ROWS, K_MAX] int32 (host-side)."""
    tok_pad = jnp.full((B_PAD, SEQ_LEN), PAD_IDX, jnp.int32)
    tok_pad = tok_pad.at[:tokens.shape[0]].set(tokens.astype(jnp.int32))
    pos = jnp.arange(SEQ_LEN)
    cols = []
    for dk in range(K_MAX):
        src = jnp.minimum(pos + dk, SEQ_LEN - 1)
        valid = (pos + dk) < SEQ_LEN
        ids = tok_pad[:, src]                                        # [B_PAD, L]
        enc = jnp.where(valid[None, :], dk * V_PAD + ids, -1)        # -1 matches nothing
        cols.append(enc.reshape(ROWS, 1))
    return jnp.concatenate(cols, axis=1).astype(jnp.int32)


def textcnn_forward(tokens, table_bd, convw, convb, fcw, fcb):
    tok_enc = pack_tokens(tokens)
    vmem = pl.BlockSpec(memory_space=pltpu.MemorySpace.VMEM)
    # Shapes are tiny -> no grid; every operand lives whole in VMEM (per perf feedback,
    # only batch in the hundreds would justify a "parallel" batch grid axis).
    out = pl.pallas_call(
        textcnn_kernel,
        out_shape=jax.ShapeDtypeStruct((B_PAD, C_PAD), jnp.float32),
        in_specs=[vmem] * 6,
        out_specs=vmem,
    )(tok_enc, table_bd, convw, convb, fcw, fcb)
    return out[:tokens.shape[0], :NUM_CLASSES]


def init_params(key):
    """Returns (raw params for the pure-JAX reference, packed params for the kernel)."""
    n = len(FILTER_SIZES)
    keys = jax.random.split(key, 2 * n + 3)

    emb = 0.1 * jax.random.normal(keys[0], (N_VOCAB, EMBED), jnp.float32)
    emb = emb.at[PAD_IDX].set(0.0)                 # nn.Embedding padding_idx semantics

    conv_raw = []
    for i, k in enumerate(FILTER_SIZES):
        w = 0.1 * jax.random.normal(keys[1 + 2 * i], (k, EMBED, NUM_FILTERS), jnp.float32)
        b = 0.1 * jax.random.normal(keys[2 + 2 * i], (NUM_FILTERS,), jnp.float32)
        conv_raw.append((w, b))

    fc_w = 0.1 * jax.random.normal(keys[-2], (n * NUM_FILTERS, NUM_CLASSES), jnp.float32)
    fc_b = 0.1 * jax.random.normal(keys[-1], (NUM_CLASSES,), jnp.float32)
    raw = (emb, conv_raw, fc_w, fc_b)

    # --- pack for the kernel ---
    # Block-diagonal embedding table: ONE matmul performs gather + im2col for all taps.
    table_bd = jnp.zeros((K_MAX * V_PAD, KE), jnp.float32)
    for dk in range(K_MAX):
        table_bd = table_bd.at[dk * V_PAD:dk * V_PAD + N_VOCAB,
                               dk * EMBED:(dk + 1) * EMBED].set(emb)

    # Lane-stacked, tap-zero-padded conv weights / bias (all filter sizes in one matrix).
    convw = jnp.zeros((KE, F3_PAD), jnp.float32)
    convb = jnp.zeros((1, F3_PAD), jnp.float32)
    for i, (w, b) in enumerate(conv_raw):
        k = w.shape[0]
        convw = convw.at[:k * EMBED, i * NUM_FILTERS:(i + 1) * NUM_FILTERS].set(
            w.reshape(k * EMBED, NUM_FILTERS))
        convb = convb.at[0, i * NUM_FILTERS:(i + 1) * NUM_FILTERS].set(b)

    # FC weight/bias, zero-padded to lane-dense shapes.
    fcw = jnp.zeros((F3_PAD, C_PAD), jnp.float32)
    fcw = fcw.at[:n * NUM_FILTERS, :NUM_CLASSES].set(fc_w)
    fcb = jnp.zeros((1, C_PAD), jnp.float32).at[0, :NUM_CLASSES].set(fc_b)

    packed = (table_bd.astype(MATMUL_DTYPE), convw.astype(MATMUL_DTYPE), convb,
              fcw.astype(MATMUL_DTYPE), fcb)
    return raw, packed


def reference_forward(tokens, raw):
    """Pure-JAX f32 reference matching the PyTorch TextCNN forward (eval mode)."""
    emb, conv_raw, fc_w, fc_b = raw
    x = emb[tokens]                                                  # [B, L, E]
    B, L, _ = x.shape
    pooled = []
    for (w, b) in conv_raw:                                          # w: [k, E, F]
        k = w.shape[0]
        T = L - k + 1
        acc = jnp.zeros((B, T, NUM_FILTERS), jnp.float32)
        for dk in range(k):
            acc = acc + jnp.einsum('ble,ef->blf', x[:, dk:dk + T, :], w[dk],
                                   precision=jax.lax.Precision.HIGHEST)
        acc = jnp.maximum(acc + b[None, None, :], 0.0)
        pooled.append(jnp.max(acc, axis=1))                          # [B, F]
    feat = jnp.concatenate(pooled, axis=1)                           # [B, 3F]
    return jnp.dot(feat, fc_w, precision=jax.lax.Precision.HIGHEST) + fc_b[None, :]


if __name__ == "__main__":
    key = jax.random.PRNGKey(0)
    k_param, k_tok = jax.random.split(key)
    raw, packed = init_params(k_param)

    # Token ids [B, L] int32, like the nn.Embedding input.
    tokens = jax.random.randint(k_tok, (BATCH, SEQ_LEN), 0, N_VOCAB, jnp.int32)

    out = textcnn_forward(tokens, *packed)
    out = jax.block_until_ready(out)
    assert out.shape == (BATCH, NUM_CLASSES), out.shape

    ref = reference_forward(tokens, raw)
    # Tolerance reflects bf16 MXU operands with f32 accumulation (per perf feedback);
    # tightened from 5e-2. With MATMUL_DTYPE = jnp.float32 this matches to ~1e-4.
    assert jnp.allclose(out, ref, atol=1e-2, rtol=1e-2), (out, ref)

    print("KERNEL_OK")
</pallas_src>

<mosaic_0001>
module attributes {stable_mosaic.version = 11 : i64} {
  func.func @textcnn_kernel(%arg0: memref<64x4xi32, #tpu.memory_space<vmem>>, %arg1: memref<512x128xbf16, #tpu.memory_space<vmem>>, %arg2: memref<128x128xbf16, #tpu.memory_space<vmem>>, %arg3: memref<1x128xf32, #tpu.memory_space<vmem>>, %arg4: memref<128x128xbf16, #tpu.memory_space<vmem>>, %arg5: memref<1x128xf32, #tpu.memory_space<vmem>>, %arg6: memref<8x128xf32, #tpu.memory_space<vmem>>) attributes {dimension_semantics = [], scalar_prefetch = 0 : i64, scratch_operands = 0 : i64, tpu.core_type = #tpu.core_type<tc>} {
    %c0 = arith.constant 0 : index
    %c0_0 = arith.constant 0 : index
    %0 = vector.load %arg0[%c0, %c0_0] : memref<64x4xi32, #tpu.memory_space<vmem>>, vector<64x4xi32>
    %1 = tpu.iota {dimensions = array<i32: 1>} : vector<64x512xi32>
    %2 = vector.extract_strided_slice %0 {offsets = [0, 0], sizes = [64, 1], strides = [1, 1]} : vector<64x4xi32> to vector<64x1xi32>
    %3 = vector.broadcast %2 : vector<64x1xi32> to vector<64x512xi32>
    %4 = arith.cmpi eq, %1, %3 : vector<64x512xi32>
    %5 = vector.extract_strided_slice %0 {offsets = [0, 1], sizes = [64, 1], strides = [1, 1]} : vector<64x4xi32> to vector<64x1xi32>
    %6 = vector.broadcast %5 : vector<64x1xi32> to vector<64x512xi32>
    %7 = arith.cmpi eq, %1, %6 : vector<64x512xi32>
    %8 = arith.ori %4, %7 : vector<64x512xi1>
    %9 = vector.extract_strided_slice %0 {offsets = [0, 2], sizes = [64, 1], strides = [1, 1]} : vector<64x4xi32> to vector<64x1xi32>
    %10 = vector.broadcast %9 : vector<64x1xi32> to vector<64x512xi32>
    %11 = arith.cmpi eq, %1, %10 : vector<64x512xi32>
    %12 = arith.ori %8, %11 : vector<64x512xi1>
    %13 = vector.extract_strided_slice %0 {offsets = [0, 3], sizes = [64, 1], strides = [1, 1]} : vector<64x4xi32> to vector<64x1xi32>
    %14 = vector.broadcast %13 : vector<64x1xi32> to vector<64x512xi32>
    %15 = arith.cmpi eq, %1, %14 : vector<64x512xi32>
    %16 = arith.ori %12, %15 : vector<64x512xi1>
    %17 = arith.extui %16 : vector<64x512xi1> to vector<64x512xi32>
    %18 = arith.sitofp %17 : vector<64x512xi32> to vector<64x512xf32>
    %19 = arith.truncf %18 : vector<64x512xf32> to vector<64x512xbf16>
    %c0_1 = arith.constant 0 : index
    %c0_2 = arith.constant 0 : index
    %20 = vector.load %arg1[%c0_1, %c0_2] : memref<512x128xbf16, #tpu.memory_space<vmem>>, vector<512x128xbf16>
    %cst = arith.constant dense<0.000000e+00> : vector<64x128xf32>
    %21 = tpu.matmul %19, %20, %cst {dimension_numbers = #tpu.dot_dimension_numbers<[1], [0], [0], [1], [0, 0, 1, 1], [], []>} : vector<64x512xbf16>, vector<512x128xbf16>, vector<64x128xf32> -> vector<64x128xf32>
    %22 = arith.truncf %21 : vector<64x128xf32> to vector<64x128xbf16>
    %c0_3 = arith.constant 0 : index
    %c0_4 = arith.constant 0 : index
    %23 = vector.load %arg2[%c0_3, %c0_4] : memref<128x128xbf16, #tpu.memory_space<vmem>>, vector<128x128xbf16>
    %cst_5 = arith.constant dense<0.000000e+00> : vector<64x128xf32>
    %24 = tpu.matmul %22, %23, %cst_5 {dimension_numbers = #tpu.dot_dimension_numbers<[1], [0], [0], [1], [0, 0, 1, 1], [], []>} : vector<64x128xbf16>, vector<128x128xbf16>, vector<64x128xf32> -> vector<64x128xf32>
    %c0_6 = arith.constant 0 : index
    %c0_7 = arith.constant 0 : index
    %25 = vector.load %arg3[%c0_6, %c0_7] : memref<1x128xf32, #tpu.memory_space<vmem>>, vector<1x128xf32>
    %26 = vector.broadcast %25 : vector<1x128xf32> to vector<64x128xf32>
    %27 = arith.addf %24, %26 : vector<64x128xf32>
    %cst_8 = arith.constant 0.000000e+00 : f32
    %28 = vector.broadcast %cst_8 : f32 to vector<64x128xf32>
    %29 = arith.maximumf %27, %28 : vector<64x128xf32>
    %30 = vector.shape_cast %29 : vector<64x128xf32> to vector<8x8x128xf32>
    %31 = tpu.iota {dimensions = array<i32: 1>} : vector<8x8x128xi32>
    %32 = tpu.iota {dimensions = array<i32: 2>} : vector<8x8x128xi32>
    %c-1_i32 = arith.constant -1 : i32
    %33 = vector.broadcast %c-1_i32 : i32 to vector<8x8x128xi32>
    %c0_i32 = arith.constant 0 : i32
    %34 = vector.broadcast %c0_i32 : i32 to vector<8x8x128xi32>
    %35 = arith.cmpi sge, %32, %34 : vector<8x8x128xi32>
    %c8_i32 = arith.constant 8 : i32
    %36 = vector.broadcast %c8_i32 : i32 to vector<8x8x128xi32>
    %37 = arith.cmpi slt, %32, %36 : vector<8x8x128xi32>
    %38 = arith.andi %35, %37 : vector<8x8x128xi1>
    %c6_i32 = arith.constant 6 : i32
    %39 = vector.broadcast %c6_i32 : i32 to vector<8x8x128xi32>
    %40 = arith.select %38, %39, %33 : vector<8x8x128xi1>, vector<8x8x128xi32>
    %c8_i32_9 = arith.constant 8 : i32
    %41 = vector.broadcast %c8_i32_9 : i32 to vector<8x8x128xi32>
    %42 = arith.cmpi sge, %32, %41 : vector<8x8x128xi32>
    %c16_i32 = arith.constant 16 : i32
    %43 = vector.broadcast %c16_i32 : i32 to vector<8x8x128xi32>
    %44 = arith.cmpi slt, %32, %43 : vector<8x8x128xi32>
    %45 = arith.andi %42, %44 : vector<8x8x128xi1>
    %c5_i32 = arith.constant 5 : i32
    %46 = vector.broadcast %c5_i32 : i32 to vector<8x8x128xi32>
    %47 = arith.select %45, %46, %40 : vector<8x8x128xi1>, vector<8x8x128xi32>
    %c16_i32_10 = arith.constant 16 : i32
    %48 = vector.broadcast %c16_i32_10 : i32 to vector<8x8x128xi32>
    %49 = arith.cmpi sge, %32, %48 : vector<8x8x128xi32>
    %c24_i32 = arith.constant 24 : i32
    %50 = vector.broadcast %c24_i32 : i32 to vector<8x8x128xi32>
    %51 = arith.cmpi slt, %32, %50 : vector<8x8x128xi32>
    %52 = arith.andi %49, %51 : vector<8x8x128xi1>
    %c4_i32 = arith.constant 4 : i32
    %53 = vector.broadcast %c4_i32 : i32 to vector<8x8x128xi32>
    %54 = arith.select %52, %53, %47 : vector<8x8x128xi1>, vector<8x8x128xi32>
    %55 = arith.cmpi sle, %31, %54 : vector<8x8x128xi32>
    %cst_11 = arith.constant 0.000000e+00 : f32
    %56 = vector.broadcast %cst_11 : f32 to vector<8x8x128xf32>
    %57 = arith.select %55, %30, %56 : vector<8x8x128xi1>, vector<8x8x128xf32>
    %cst_12 = arith.constant dense<0xFF800000> : vector<8x128xf32>
    %58 = vector.multi_reduction <maximumf>, %57, %cst_12 [1] : vector<8x8x128xf32> to vector<8x128xf32>
    %59 = arith.truncf %58 : vector<8x128xf32> to vector<8x128xbf16>
    %c0_13 = arith.constant 0 : index
    %c0_14 = arith.constant 0 : index
    %60 = vector.load %arg4[%c0_13, %c0_14] : memref<128x128xbf16, #tpu.memory_space<vmem>>, vector<128x128xbf16>
    %cst_15 = arith.constant dense<0.000000e+00> : vector<8x128xf32>
    %61 = tpu.matmul %59, %60, %cst_15 {dimension_numbers = #tpu.dot_dimension_numbers<[1], [0], [0], [1], [0, 0, 1, 1], [], []>} : vector<8x128xbf16>, vector<128x128xbf16>, vector<8x128xf32> -> vector<8x128xf32>
    %c0_16 = arith.constant 0 : index
    %c0_17 = arith.constant 0 : index
    %62 = vector.load %arg5[%c0_16, %c0_17] : memref<1x128xf32, #tpu.memory_space<vmem>>, vector<1x128xf32>
    %63 = vector.broadcast %62 : vector<1x128xf32> to vector<8x128xf32>
    %64 = arith.addf %61, %63 : vector<8x128xf32>
    %c0_18 = arith.constant 0 : index
    %c0_19 = arith.constant 0 : index
    %65 = vector.load %arg6[%c0_18, %c0_19] : memref<8x128xf32, #tpu.memory_space<vmem>>, vector<8x128xf32>
    tpu.vector_store %arg6[%c0_18, %c0_19], %64 {strides = array<i32>} : memref<8x128xf32, #tpu.memory_space<vmem>>, vector<8x128xf32>,
    return
  }
}

</mosaic_0001>

<bundles_post_ra>
// kernel: tpu_custom_call.1
= control target key start
LH: loop header
LB: loop body
LE: loop exit
PB: predicated region body
PF: predicated region fallthrough
CT: control target
= control target key end

     0   :  { %11 = vsyncpa [#allocation3], 0  ;;  %s2270_s0 = inlined_call_operand.vmem [shape: s32[64,4], index: 0, kind: input, shape index: {}]   ;;  %s2271_s1 = inlined_call_operand.hbm [shape: bf16[512,128], index: 1, kind: input, shape index: {}]   ;;  %s2272_s2 = inlined_call_operand.vmem [shape: bf16[128,128], index: 2, kind: input, shape index: {}]   ;;  %s2273_s3 = inlined_call_operand.vmem [shape: f32[1,128], index: 3, kind: input, shape index: {}]   ;;  %s2274_s4 = inlined_call_operand.hbm [shape: bf16[128,128], index: 4, kind: input, shape index: {}]   ;;  %s2275_s5 = inlined_call_operand.vmem [shape: f32[1,128], index: 5, kind: input, shape index: {}]   ;;  %s2276_s6 = inlined_call_operand.hbm [shape: f32[8,128], index: 6, kind: output, shape index: {}]  }
   0x1   :  { %12 = vsyncpa [#allocation6], 0 }
   0x2   :  { %13 = vsyncpa [#allocation4], 0  ;;  %s20_s23 = sshll.u32 %s2271_s1, 4  ;;  %s1592_s24 = smov [#allocation2]   ;;  %s21_s23 = int_to_ptr.hbm [resolvable:$true] %s20_s23 }
   0x3   :  { %s22_s25 = sshll.u32 %s1592_s24, 4  ;;  %s37_s28 = sshll.u32 %s2274_s4, 4  ;;  %s23_s25 = int_to_ptr.vmem [resolvable:$true] %s22_s25  ;;  %s38_s28 = int_to_ptr.hbm [resolvable:$true] %s37_s28 }
   0x4   :  { %s1593_s29 = smov 64   ;;  %s1594_s30 = smov 4  }
   0x5   :  { %28 = dma.hbm_to_vmem [thread:$0]  %s21_s23, 4096, %s23_s25, [#allocation3], %s1593_s29, %s1593_s29, %s1594_s30  }
   0x6   :  { %s1595_s7 = smov [#allocation5]  }
   0x7   :  { %s39_s8 = sshll.u32 %s1595_s7, 4  ;;  %s40_s8 = int_to_ptr.vmem [resolvable:$true] %s39_s8 }
   0x8   :  { %45 = dma.hbm_to_vmem [thread:$0]  %s38_s28, 1024, %s40_s8, [#allocation6], %s1593_s29, %s1593_s29, %s1594_s30  }
   0x9   :  { %1586 = dma.done.wait [#allocation3], 4096  }
   0xa   :  { %1587 = vsyncadd [#allocation3], 4294963200 }
   0xb   :  { %1588 = dma.done.wait [#allocation6], 1024  }
   0xc   :  { %1589 = vsyncadd [#allocation6], 4294966272  ;;  %v1596_v0 = vmov 3   ;;  %v1597_v1 = vmov 1   ;;  %v1598_v2 = vmov 2   ;;  %v60_v3 = vld [vmem:[%s2270_s0 + $0x20] sm:$0xff]  ;;  %v64_v31 = vlaneseq }
   0xd   :  { %1486 = vset.pattern.permute.xlu0 %v1596_v0  ;;  %1484 = vset.pattern.permute.xlu1 %v1597_v1  ;;  %v61_v4 = vld [vmem:[%s2270_s0 + $0x28] sm:$0xff]  ;;  %v63_v5 = vld [vmem:[%s2270_s0 + $0x38] sm:$0xff]  ;;  %v62_v6 = vld [vmem:[%s2270_s0 + $0x30] sm:$0xff]  ;;  %v1599_v7 = vmov 0   ;;  %v2287_v52 = vmov 0  ;;  %v2342_v54 = vmov 0 }
   0xe   :  { %1485 = vset.pattern.permute.xlu2 %v1598_v2  ;;  %314 = vperm.xlu0 %1486, %v60_v3   ;;  %v56_v8 = vld [vmem:[%s2270_s0] sm:$0xff]  ;;  %v57_v9 = vld [vmem:[%s2270_s0 + $0x8] sm:$0xff]  ;;  %v58_v10 = vld [vmem:[%s2270_s0 + $0x10] sm:$0xff]  ;;  %v1707_v32 = vand.u32 127, %v64_v31  ;;  %v1600_v58 = vmov 1.0|1.0  }
   0xf   :  { %138 = vperm.xlu1 %1484, %v60_v3   ;;  %226 = vperm.xlu2 %1485, %v60_v3   ;;  %v59_v11 = vld [vmem:[%s2270_s0 + $0x18] sm:$0xff]  ;;  %v1423_v13 = vld [vmem:[#allocation2 + $0x30] sm:$0xff]  ;;  %v1422_v14 = vld [vmem:[#allocation2 + $0x28] sm:$0xff]  ;;  %s1602_s14 = smov [#allocation7]   ;;  %s1150_s18 = sshll.u32 %s2276_s6, 4  ;;  %s1151_s18 = int_to_ptr.hbm [resolvable:$true] %s1150_s18 }
  0x10   :  { %v1424_v12 = vld [vmem:[#allocation2 + $0x38] sm:$0xff]  ;;  %v1421_v15 = vld [vmem:[#allocation2 + $0x20] sm:$0xff]  ;;  %v1419_v18 = vld [vmem:[#allocation2 + $0x10] sm:$0xff]  ;;  %v1720_v42 = vadd.s32 128, %v1707_v32  ;;  %v1729_v43 = vadd.s32 256, %v1707_v32  ;;  %s1148_s15 = sshll.u32 %s1602_s14, 4  ;;  %s1149_s15 = int_to_ptr.vmem [resolvable:$true] %s1148_s15 }
  0x11   :  { %1465 = vmatpush.bf16.msra.mxu2 %v1424_v12  ;;  %725 = vmatpush.bf16.msra.mxu0 %v1424_v12  ;;  %v1420_v17 = vld [vmem:[#allocation2 + $0x18] sm:$0xff]  ;;  %v1418_v20 = vld [vmem:[#allocation2 + $0x8] sm:$0xff]  ;;  %v1417_v21 = vld [vmem:[#allocation2] sm:$0xff]  ;;  %v2297_v12 = vmov 0 }
  0x12   :  { %v1432_v28 = vld [vmem:[#allocation2 + $0x78] sm:$0xff]  ;;  %v1431_v33 = vld [vmem:[#allocation2 + $0x70] sm:$0xff]  ;;  %v1430_v38 = vld [vmem:[#allocation2 + $0x68] sm:$0xff] }
  0x13   :  { %v1440_v29 = vld [vmem:[#allocation2 + $0xb8] sm:$0xff]  ;;  %754 = vmatpush.bf16.msra.mxu1 %v1432_v28  ;;  %v1439_v34 = vld [vmem:[#allocation2 + $0xb0] sm:$0xff]  ;;  %v1438_v39 = vld [vmem:[#allocation2 + $0xa8] sm:$0xff] }
  0x14   :  { %v1448_v30 = vld [vmem:[#allocation2 + $0xf8] sm:$0xff]  ;;  %v1447_v35 = vld [vmem:[#allocation2 + $0xf0] sm:$0xff]  ;;  %v1446_v41 = vld [vmem:[#allocation2 + $0xe8] sm:$0xff] }
  0x15   :  { %1466 = vmatpush.bf16.msra.mxu2 %v1423_v13  ;;  %726 = vmatpush.bf16.msra.mxu0 %v1423_v13  ;;  %v1429_v44 = vld [vmem:[#allocation2 + $0x60] sm:$0xff]  ;;  %v1428_v50 = vld [vmem:[#allocation2 + $0x58] sm:$0xff]  ;;  %v1427_v56 = vld [vmem:[#allocation2 + $0x50] sm:$0xff]  ;;  %v2299_v13 = vmov 0 }
  0x16   :  { %1491 = vset.pattern.permute.xlu0 %v1597_v1  ;;  %812 = vmatpush.bf16.msra.mxu3 %v1448_v30  ;;  %v1437_v45 = vld [vmem:[#allocation2 + $0xa0] sm:$0xff]  ;;  %v1436_v51 = vld [vmem:[#allocation2 + $0x98] sm:$0xff]  ;;  %v1435_v57 = vld [vmem:[#allocation2 + $0x90] sm:$0xff] }
  0x17   :  { %141 = vperm.xlu1 %1484, %v61_v4   ;;  %147 = vperm.xlu0 %1491, %v63_v5   ;;  %v1445_v47 = vld [vmem:[#allocation2 + $0xe0] sm:$0xff]  ;;  %v1444_v53 = vld [vmem:[#allocation2 + $0xd8] sm:$0xff]  ;;  %v1443_v59 = vld [vmem:[#allocation2 + $0xd0] sm:$0xff] }
  0x18   :  { %229 = vperm.xlu2 %1485, %v61_v4   ;;  %755 = vmatpush.bf16.msra.mxu1 %v1431_v33  ;;  %v1426_v60 = vld [vmem:[#allocation2 + $0x48] sm:$0xff] }
  0x19   :  { %1467 = vmatpush.bf16.msra.mxu2 %v1422_v14  ;;  %727 = vmatpush.bf16.msra.mxu0 %v1422_v14  ;;  %v1434_v61 = vld [vmem:[#allocation2 + $0x88] sm:$0xff]  ;;  %v2301_v14 = vmov 0 }
  0x1a   :  { %813 = vmatpush.bf16.msra.mxu3 %v1447_v35  ;;  %v1442_v63 = vld [vmem:[#allocation2 + $0xc8] sm:$0xff] }
  0x1c   :  { %756 = vmatpush.bf16.msra.mxu1 %v1430_v38 }
  0x1d   :  { %1468 = vmatpush.bf16.msra.mxu2 %v1421_v15  ;;  %728 = vmatpush.bf16.msra.mxu0 %v1421_v15 }
  0x1e   :  { %814 = vmatpush.bf16.msra.mxu3 %v1446_v41 }
  0x1f   :  { %1487 = vset.pattern.permute.xlu1 %v1596_v0  ;;  %1492 = vset.pattern.permute.xlu0 %v1599_v7 }
  0x20   :  { %317 = vperm.xlu1 %1487, %v61_v4   ;;  %82 = vperm.xlu0 %1492, %v60_v3   ;;  %v1433_v3 = vld [vmem:[#allocation2 + $0x80] sm:$0xff] }
  0x21   :  { %1488 = vset.pattern.permute.xlu2 %v1599_v7  ;;  %1469 = vmatpush.bf16.msra.mxu2 %v1420_v17 }
  0x22   :  { %88 = vperm.xlu2 %1488, %v62_v6   ;;  %729 = vmatpush.bf16.msra.mxu0 %v1420_v17  ;;  %v2303_v17 = vmov 0 }
  0x23   :  { %757 = vmatpush.bf16.msra.mxu1 %v1429_v44  ;;  %815 = vmatpush.bf16.msra.mxu3 %v1445_v47  ;;  %v2330_v44 = vmov 0 }
  0x25   :  { %1470 = vmatpush.bf16.msra.mxu2 %v1419_v18 }
  0x26   :  { %730 = vmatpush.bf16.msra.mxu0 %v1419_v18 }
  0x27   :  { %758 = vmatpush.bf16.msra.mxu1 %v1428_v50  ;;  %816 = vmatpush.bf16.msra.mxu3 %v1444_v53  ;;  %v2338_v50 = vmov 0  ;;  %v2340_v53 = vmov 0 }
  0x28   :  { %1489 = vset.pattern.permute.xlu1 %v1599_v7  ;;  %85 = vperm.xlu0 %1492, %v61_v4   ;;  %v1441_v4 = vld [vmem:[#allocation2 + $0xc0] sm:$0xff] }
  0x29   :  { %91 = vperm.xlu1 %1489, %v63_v5   ;;  %1471 = vmatpush.bf16.msra.mxu2 %v1418_v20 }
  0x2a   :  { %1490 = vset.pattern.permute.xlu2 %v1597_v1  ;;  %731 = vmatpush.bf16.msra.mxu0 %v1418_v20  ;;  %v2305_v20 = vmov 0 }
  0x2b   :  { %144 = vperm.xlu2 %1490, %v62_v6   ;;  %759 = vmatpush.bf16.msra.mxu1 %v1427_v56  ;;  %v2345_v56 = vmov 0 }
  0x2c   :  { %817 = vmatpush.bf16.msra.mxu3 %v1443_v59  ;;  %v2356_v59 = vmov 0 }
  0x2d   :  { %1472 = vmatpush.bf16.msra.mxu2 %v1417_v21 }
  0x2e   :  { %732 = vmatpush.bf16.msra.mxu0 %v1417_v21 }
  0x2f   :  { %760 = vmatpush.bf16.msra.mxu1 %v1426_v60 }
  0x30   :  { %70 = vperm.xlu0 %1492, %v56_v8   ;;  %818 = vmatpush.bf16.msra.mxu3 %v1442_v63  ;;  %v1449_v63 = vld [vmem:[%s2272_s2] sm:$0xff] }
  0x31   :  { %1493 = vset.pattern.permute.xlu1 %v1598_v2  ;;  %783 = vmatpush.bf16.msrb.mxu2 %v1440_v29  ;;  %v2319_v29 = vmov 0 }
  0x32   :  { %232 = vperm.xlu1 %1493, %v62_v6  }
  0x33   :  { %1494 = vset.pattern.permute.xlu2 %v1598_v2 }
  0x34   :  { %235 = vperm.xlu2 %1494, %v63_v5   ;;  %819 = vmatpush.bf16.msra.mxu3 %v1441_v4 }
  0x35   :  { %784 = vmatpush.bf16.msrb.mxu2 %v1439_v34 }
  0x38   :  { %1501 = vset.pattern.permute.xlu0 %v1598_v2 }
  0x39   :  { %217 = vperm.xlu0 %1501, %v57_v9   ;;  %785 = vmatpush.bf16.msrb.mxu2 %v1438_v39 }
  0x3a   :  { %1495 = vset.pattern.permute.xlu1 %v1596_v0 }
  0x3b   :  { %320 = vperm.xlu1 %1495, %v62_v6  }
  0x3c   :  { %1496 = vset.pattern.permute.xlu2 %v1596_v0 }
  0x3d   :  { %323 = vperm.xlu2 %1496, %v63_v5   ;;  %786 = vmatpush.bf16.msrb.mxu2 %v1437_v45  ;;  %v2332_v45 = vmov 0 }
  0x41   :  { %1506 = vset.pattern.permute.xlu0 %v1597_v1  ;;  %787 = vmatpush.bf16.msrb.mxu2 %v1436_v51 }
  0x42   :  { %132 = vperm.xlu0 %1506, %v58_v10  }
  0x43   :  { %1497 = vset.pattern.permute.xlu1 %v1599_v7 }
  0x44   :  { %73 = vperm.xlu1 %1497, %v57_v9  }
  0x45   :  { %1498 = vset.pattern.permute.xlu2 %v1597_v1  ;;  %788 = vmatpush.bf16.msrb.mxu2 %v1435_v57 }
  0x46   :  { %126 = vperm.xlu2 %1498, %v56_v8  }
  0x49   :  { %789 = vmatpush.bf16.msrb.mxu2 %v1434_v61 }
  0x4a   :  { %1511 = vset.pattern.permute.xlu0 %v1596_v0 }
  0x4b   :  { %311 = vperm.xlu0 %1511, %v59_v11  }
  0x4c   :  { %1499 = vset.pattern.permute.xlu1 %v1597_v1 }
  0x4d   :  { %129 = vperm.xlu1 %1499, %v57_v9   ;;  %790 = vmatpush.bf16.msrb.mxu2 %v1433_v3 }
  0x4e   :  { %1500 = vset.pattern.permute.xlu2 %v1598_v2 }
  0x4f   :  { %214 = vperm.xlu2 %1500, %v56_v8  }
  0x55   :  { %1502 = vset.pattern.permute.xlu1 %v1596_v0 }
  0x56   :  { %302 = vperm.xlu1 %1502, %v56_v8   ;;  %v2293_v8 = vmov 0 }
  0x57   :  { %1503 = vset.pattern.permute.xlu2 %v1596_v0 }
  0x58   :  { %305 = vperm.xlu2 %1503, %v57_v9   ;;  %v1832_v9 = vadd.s32 384, %v1707_v32 }
  0x5e   :  { %1504 = vset.pattern.permute.xlu1 %v1599_v7 }
  0x5f   :  { %76 = vperm.xlu1 %1504, %v58_v10  }
  0x60   :  { %1505 = vset.pattern.permute.xlu2 %v1599_v7 }
  0x61   :  { %79 = vperm.xlu2 %1505, %v59_v11  }
  0x67   :  { %1507 = vset.pattern.permute.xlu1 %v1597_v1 }
  0x68   :  { %135 = vperm.xlu1 %1507, %v59_v11  }
  0x69   :  { %1508 = vset.pattern.permute.xlu2 %v1598_v2  ;;  %v1688_v16 = vpop.permute.xlu2 %226 }
  0x6a   :  { %220 = vperm.xlu2 %1508, %v58_v10   ;;  %vm253_vm3 = vcmp.eq.s32.totalorder %v1707_v32, %v1688_v16  ;;  %vm254_vm11 = vcmp.eq.s32.totalorder %v1720_v42, %v1688_v16 }
  0x70   :  { %1509 = vset.pattern.permute.xlu1 %v1598_v2  ;;  %v1425_v2 = vld [vmem:[#allocation2 + $0x40] sm:$0xff] }
  0x71   :  { %223 = vperm.xlu1 %1509, %v59_v11   ;;  %761 = vmatpush.bf16.msra.mxu1 %v1425_v2 }
  0x72   :  { %1510 = vset.pattern.permute.xlu2 %v1596_v0  ;;  %v1692_v19 = vpop.permute.xlu2 %229 }
  0x73   :  { %308 = vperm.xlu2 %1510, %v58_v10  }
  0x7c   :  { %v1694_v22 = vpop.permute.xlu2 %88 }
  0x80   :  { %v1698_v24 = vpop.permute.xlu0 %314 }
  0x81   :  { %v1696_v23 = vpop.permute.xlu1 %138  ;;  %vm341_vm4 = vcmp.eq.s32.totalorder %v1707_v32, %v1698_v24  ;;  %vm342_vm9 = vcmp.eq.s32.totalorder %v1720_v42, %v1698_v24 }
  0x82   :  { %vm165_vm1 = vcmp.eq.s32.totalorder %v1707_v32, %v1696_v23  ;;  %vm166_vm8 = vcmp.eq.s32.totalorder %v1720_v42, %v1696_v23  ;;  %vm167_vm15 = vcmp.eq.s32.totalorder %v1729_v43, %v1696_v23 }
  0x85   :  { %v1704_v27 = vpop.permute.xlu2 %144 }
  0x89   :  { %v1700_v25 = vpop.permute.xlu1 %141  ;;  %v1702_v26 = vpop.permute.xlu0 %147 }
  0x8e   :  { %v1713_v40 = vpop.permute.xlu2 %235 }
  0x92   :  { %v1709_v36 = vpop.permute.xlu1 %317  ;;  %v1711_v37 = vpop.permute.xlu0 %82 }
  0x93   :  { %vm109_vm0 = vcmp.eq.s32.totalorder %v1707_v32, %v1711_v37  ;;  %vm110_vm6 = vcmp.eq.s32.totalorder %v1720_v42, %v1711_v37  ;;  %vm111_vm12 = vcmp.eq.s32.totalorder %v1729_v43, %v1711_v37 }
  0x94   :  { %vm197_vm2 = vmor %vm109_vm0, %vm165_vm1  ;;  %vm169_vm1 = vcmp.eq.s32.totalorder %v1707_v32, %v1700_v25 }
  0x95   :  { %vm285_vm5 = vmor %vm197_vm2, %vm253_vm3 }
  0x96   :  { %vm1731_vm7 = vmor %vm285_vm5, %vm341_vm4  ;;  %vm257_vm4 = vcmp.eq.s32.totalorder %v1707_v32, %v1692_v19 }
  0x97   :  { %vm198_vm10 = vmor %vm110_vm6, %vm166_vm8  ;;  %v1763_v55 = vpop.permute.xlu2 %323  ;;  %vm345_vm6 = vcmp.eq.s32.totalorder %v1707_v32, %v1709_v36 }
  0x98   :  { %vm286_vm13 = vmor %vm198_vm10, %vm254_vm11  ;;  %vm170_vm11 = vcmp.eq.s32.totalorder %v1720_v42, %v1700_v25 }
  0x99   :  { %vm1747_vm14 = vmor %vm286_vm13, %vm342_vm9 }
  0x9a   :  { %v1743_v48 = vpop.permute.xlu0 %85  ;;  %v2288_v52 = vsel %vm1747_vm14, 4294967295, %v2287_v52  ;;  %vm1757_vm2 = vmor %vm111_vm12, %vm167_vm15  ;;  %vm177_vm12 = vcmp.eq.s32.totalorder %v1707_v32, %v1702_v26  ;;  %vm347_vm14 = vcmp.eq.s32.totalorder %v1729_v43, %v1709_v36 }
  0x9b   :  { %v1745_v49 = vpop.permute.xlu1 %91  ;;  %vm113_vm0 = vcmp.eq.s32.totalorder %v1707_v32, %v1743_v48  ;;  %vm114_vm10 = vcmp.eq.s32.totalorder %v1720_v42, %v1743_v48 }
  0x9c   :  { %vm201_vm3 = vmor %vm113_vm0, %vm169_vm1  ;;  %vm265_vm0 = vcmp.eq.s32.totalorder %v1707_v32, %v1713_v40  ;;  %vm117_vm1 = vcmp.eq.s32.totalorder %v1707_v32, %v1694_v22 }
  0x9d   :  { %vm289_vm5 = vmor %vm201_vm3, %vm257_vm4  ;;  %vm173_vm3 = vcmp.eq.s32.totalorder %v1707_v32, %v1704_v27 }
  0x9e   :  { %vm377_vm8 = vmor %vm289_vm5, %vm345_vm6  ;;  %vm353_vm5 = vcmp.eq.s32.totalorder %v1707_v32, %v1763_v55 }
  0x9f   :  { %vm1325_vm9 = vmpackc.low %vm377_vm8, %vm1731_vm7  ;;  %vm121_vm7 = vcmp.eq.s32.totalorder %v1707_v32, %v1745_v49 }
  0xa0   :  { %1326 = vmatmul.msk.bf16.vlgmr.msra.gmra.mxu2 %vm1325_vm9, %v1600_v58  ;;  %vm1780_vm13 = vmor %vm114_vm10, %vm170_vm11  ;;  %v1786_v1 = vpop.permute.xlu2 %126 }
  0xa1   :  { %vm209_vm15 = vmor %vm121_vm7, %vm177_vm12 }
  0xa2   :  { %vm297_vm4 = vmor %vm209_vm15, %vm265_vm0  ;;  %v71_v6 = vpop.permute.xlu0 %70  ;;  %vm258_vm15 = vcmp.eq.s32.totalorder %v1720_v42, %v1692_v19 }
  0xa3   :  { %vm205_vm8 = vmor %vm117_vm1, %vm173_vm3  ;;  %vm346_vm1 = vcmp.eq.s32.totalorder %v1720_v42, %v1709_v36  ;;  %vm115_vm3 = vcmp.eq.s32.totalorder %v1729_v43, %v1743_v48 }
  0xa4   :  { %v1774_v62 = vpop.permute.xlu1 %232  ;;  %vm385_vm9 = vmor %vm297_vm4, %vm353_vm5  ;;  %vm93_vm5 = vcmp.eq.s32.totalorder %v1707_v32, %v71_v6 }
  0xa5   :  { %vm261_vm6 = vcmp.eq.s32.totalorder %v1707_v32, %v1774_v62  ;;  %vm290_vm0 = vmor %vm1780_vm13, %vm258_vm15  ;;  %vm259_vm15 = vcmp.eq.s32.totalorder %v1729_v43, %v1692_v19  ;;  %vm95_vm13 = vcmp.eq.s32.totalorder %v1729_v43, %v71_v6 }
  0xa6   :  { %vm293_vm10 = vmor %vm205_vm8, %vm261_vm6  ;;  %vm149_vm6 = vcmp.eq.s32.totalorder %v1707_v32, %v1786_v1  ;;  %vm171_vm8 = vcmp.eq.s32.totalorder %v1729_v43, %v1700_v25 }
  0xa7   :  { %vm1811_vm4 = vmor %vm290_vm0, %vm346_vm1 }
  0xa8   :  { %v2294_v8 = vsel %vm1811_vm4, 4294967295, %v2293_v8  ;;  %vm1840_vm1 = vmor %vm93_vm5, %vm149_vm6 }
  0xa9   :  { %v1809_v7 = vpop.permute.xlu2 %214 }
  0xab   :  { %v218_v18 = vpop.permute.xlu0 %217 }
  0xad   :  { %v1796_v5 = vpop.permute.xlu1 %320 }
  0xae   :  { %vm349_vm11 = vcmp.eq.s32.totalorder %v1707_v32, %v1796_v5 }
  0xaf   :  { %vm381_vm7 = vmor %vm293_vm10, %vm349_vm11  ;;  %vm255_vm10 = vcmp.eq.s32.totalorder %v1729_v43, %v1688_v16  ;;  %vm343_vm11 = vcmp.eq.s32.totalorder %v1729_v43, %v1698_v24 }
  0xb0   :  { %vm1327_vm12 = vmpackc.low %vm385_vm9, %vm381_vm7  ;;  %vm94_vm7 = vcmp.eq.s32.totalorder %v1720_v42, %v71_v6 }
  0xb1   :  { %1328 = vmatmul.msk.bf16.gmra.mxu2 %vm1327_vm12, %v1600_v58  ;;  %vm203_vm9 = vmor %vm115_vm3, %vm171_vm8  ;;  %vm150_vm12 = vcmp.eq.s32.totalorder %v1720_v42, %v1786_v1  ;;  %vm151_vm8 = vcmp.eq.s32.totalorder %v1729_v43, %v1786_v1 }
  0xb2   :  { %vm287_vm0 = vmor %vm1757_vm2, %vm255_vm10  ;;  %vm112_vm2 = vcmp.eq.s32.totalorder %v1832_v9, %v1711_v37  ;;  %v1871_v15 = vpop.permute.xlu2 %305  ;;  %vm256_vm10 = vcmp.eq.s32.totalorder %v1832_v9, %v1688_v16  ;;  %v2307_v16 = vmov 0 }
  0xb3   :  { %vm291_vm3 = vmor %vm203_vm9, %vm259_vm15  ;;  %vm116_vm9 = vcmp.eq.s32.totalorder %v1832_v9, %v1743_v48  ;;  %vm96_vm15 = vcmp.eq.s32.totalorder %v1832_v9, %v71_v6  ;;  %v2336_v48 = vmov 0 }
  0xb4   :  { %vm1849_vm4 = vmor %vm287_vm0, %vm343_vm11  ;;  %vm168_vm11 = vcmp.eq.s32.totalorder %v1832_v9, %v1696_v23  ;;  %vm152_vm0 = vcmp.eq.s32.totalorder %v1832_v9, %v1786_v1  ;;  %v133_v38 = vpop.permute.xlu0 %132 }
  0xb5   :  { %v2298_v12 = vsel %vm1849_vm4, 4294967295, %v2297_v12  ;;  %vm1855_vm5 = vmor %vm94_vm7, %vm150_vm12  ;;  %vm344_vm4 = vcmp.eq.s32.totalorder %v1832_v9, %v1698_v24 }
  0xb6   :  { %v1838_v10 = vpop.permute.xlu1 %73  ;;  %v2300_v13 = vsel %vm1855_vm5, 4294967295, %v2299_v13  ;;  %vm1859_vm6 = vmor %vm291_vm3, %vm347_vm14  ;;  %vm172_vm14 = vcmp.eq.s32.totalorder %v1832_v9, %v1700_v25  ;;  %v2316_v25 = vmov 0 }
  0xb7   :  { %v2302_v14 = vsel %vm1859_vm6, 4294967295, %v2301_v14  ;;  %vm1873_vm7 = vmor %vm95_vm13, %vm151_vm8  ;;  %vm260_vm13 = vcmp.eq.s32.totalorder %v1832_v9, %v1692_v19  ;;  %v2309_v19 = vmov 0 }
  0xb8   :  { %v2304_v17 = vsel %vm1873_vm7, 4294967295, %v2303_v17  ;;  %vm200_vm12 = vmor %vm112_vm2, %vm168_vm11  ;;  %vm237_vm2 = vcmp.eq.s32.totalorder %v1707_v32, %v1809_v7  ;;  %vm241_vm7 = vcmp.eq.s32.totalorder %v1707_v32, %v218_v18 }
  0xb9   :  { %vm204_vm3 = vmor %vm116_vm9, %vm172_vm14  ;;  %vm348_vm9 = vcmp.eq.s32.totalorder %v1832_v9, %v1709_v36 }
  0xba   :  { %vm288_vm8 = vmor %vm200_vm12, %vm256_vm10  ;;  %vm97_vm10 = vcmp.eq.s32.totalorder %v1707_v32, %v1838_v10 }
  0xbb   :  { %vm292_vm6 = vmor %vm204_vm3, %vm260_vm13  ;;  %v1941_v28 = vpop.permute.xlu2 %79 }
  0xbc   :  { %vm1890_vm11 = vmor %vm96_vm15, %vm152_vm0  ;;  %vm329_vm15 = vcmp.eq.s32.totalorder %v1707_v32, %v1871_v15 }
  0xbd   :  { %v2306_v20 = vsel %vm1890_vm11, 4294967295, %v2305_v20  ;;  %vm1896_vm14 = vmor %vm288_vm8, %vm344_vm4  ;;  %vm238_vm4 = vcmp.eq.s32.totalorder %v1720_v42, %v1809_v7  ;;  %vm239_vm8 = vcmp.eq.s32.totalorder %v1729_v43, %v1809_v7  ;;  %vm242_vm11 = vcmp.eq.s32.totalorder %v1720_v42, %v218_v18  ;;  %v312_v46 = vpop.permute.xlu0 %311 }
  0xbe   :  { %v2308_v16 = vsel %vm1896_vm14, 4294967295, %v2307_v16  ;;  %vm1901_vm5 = vmor %vm292_vm6, %vm348_vm9  ;;  %vm2318_vm14 = vnez %v2304_v17 }
  0xbf   :  { %v130_v21 = vpop.permute.xlu1 %129  ;;  %v2310_v19 = vsel %vm1901_vm5, 4294967295, %v2309_v19  ;;  %vm1918_vm3 = vmor %vm1840_vm1, %vm237_vm2  ;;  %vm2315_vm1 = vnez %v2300_v13 }
  0xc0   :  { %vm153_vm12 = vcmp.eq.s32.totalorder %v1707_v32, %v130_v21  ;;  %vm154_vm13 = vcmp.eq.s32.totalorder %v1720_v42, %v130_v21  ;;  %vm1934_vm2 = vmor %vm2315_vm1, %vm238_vm4  ;;  %vm99_vm4 = vcmp.eq.s32.totalorder %v1729_v43, %v1838_v10 }
  0xc1   :  { %vm185_vm6 = vmor %vm97_vm10, %vm153_vm12  ;;  %vm98_vm10 = vcmp.eq.s32.totalorder %v1720_v42, %v1838_v10  ;;  %v2317_v25 = vsel %vm1934_vm2, 4294967295, %v2316_v25  ;;  %vm330_vm12 = vcmp.eq.s32.totalorder %v1720_v42, %v1871_v15  ;;  %vm331_vm2 = vcmp.eq.s32.totalorder %v1729_v43, %v1871_v15 }
  0xc2   :  { %vm273_vm9 = vmor %vm185_vm6, %vm241_vm7  ;;  %vm155_vm7 = vcmp.eq.s32.totalorder %v1729_v43, %v130_v21  ;;  %vm243_vm6 = vcmp.eq.s32.totalorder %v1729_v43, %v218_v18 }
  0xc3   :  { %vm1926_vm0 = vmor %vm273_vm9, %vm329_vm15 }
  0xc4   :  { %vm186_vm15 = vmor %vm98_vm10, %vm154_vm13  ;;  %vm240_vm13 = vcmp.eq.s32.totalorder %v1832_v9, %v1809_v7  ;;  %v221_v36 = vpop.permute.xlu2 %220 }
  0xc5   :  { %vm274_vm9 = vmor %vm186_vm15, %vm242_vm11 }
  0xc6   :  { %vm1946_vm5 = vmor %vm2318_vm14, %vm239_vm8 }
  0xc7   :  { %v2320_v29 = vsel %vm1946_vm5, 4294967295, %v2319_v29  ;;  %vm1952_vm1 = vmor %vm274_vm9, %vm330_vm12  ;;  %vm2325_vm12 = vnez %v2306_v20 }
  0xc8   :  { %vm187_vm11 = vmor %vm99_vm4, %vm155_vm7  ;;  %v303_v33 = vpop.permute.xlu1 %302 }
  0xc9   :  { %vm275_vm10 = vmor %vm187_vm11, %vm243_vm6  ;;  %vm325_vm14 = vcmp.eq.s32.totalorder %v1707_v32, %v303_v33  ;;  %vm326_vm8 = vcmp.eq.s32.totalorder %v1720_v42, %v303_v33  ;;  %vm327_vm6 = vcmp.eq.s32.totalorder %v1729_v43, %v303_v33 }
  0xca   :  { %vm1962_vm15 = vmor %vm275_vm10, %vm331_vm2  ;;  %vm2328_vm2 = vnez %v2317_v25 }
  0xcb   :  { %vm1968_vm9 = vmor %vm2325_vm12, %vm240_vm13  ;;  %vm156_vm13 = vcmp.eq.s32.totalorder %v1832_v9, %v130_v21  ;;  %vm332_vm12 = vcmp.eq.s32.totalorder %v1832_v9, %v1871_v15 }
  0xcc   :  { %vm357_vm5 = vmor %vm1918_vm3, %vm325_vm14  ;;  %vm2329_vm3 = vnez %v2320_v29  ;;  %vm100_vm14 = vcmp.eq.s32.totalorder %v1832_v9, %v1838_v10 }
  0xcd   :  { %vm1321_vm7 = vmpackc.low %vm1926_vm0, %vm357_vm5  ;;  %vm244_vm5 = vcmp.eq.s32.totalorder %v1832_v9, %v218_v18  ;;  %v309_v39 = vpop.permute.xlu2 %308 }
  0xce   :  { %1322 = vmatmul.msk.bf16.vlgmr.msra.gmra.mxu0 %vm1321_vm7, %v1600_v58  ;;  %vm358_vm4 = vmor %vm2328_vm2, %vm326_vm8  ;;  %vm328_vm8 = vcmp.eq.s32.totalorder %v1832_v9, %v303_v33 }
  0xcf   :  { %vm1329_vm11 = vmpackc.low %vm1952_vm1, %vm358_vm4 }
  0xd0   :  { %1330 = vmatmul.msk.bf16.vlgmr.msra.gmra.mxu1 %vm1329_vm11, %v1600_v58  ;;  %vm359_vm10 = vmor %vm2329_vm3, %vm327_vm6  ;;  %vm157_vm11 = vcmp.eq.s32.totalorder %v1707_v32, %v133_v38 }
  0xd1   :  { %vm1337_vm0 = vmpackc.low %vm1962_vm15, %vm359_vm10  ;;  %v77_v37 = vpop.permute.xlu1 %76 }
  0xd2   :  { %1338 = vmatmul.msk.bf16.vlgmr.msrb.gmra.mxu2 %vm1337_vm0, %v1600_v58  ;;  %vm188_vm1 = vmor %vm100_vm14, %vm156_vm13  ;;  %vm101_vm15 = vcmp.eq.s32.totalorder %v1707_v32, %v77_v37  ;;  %vm245_vm13 = vcmp.eq.s32.totalorder %v1707_v32, %v221_v36  ;;  %vm102_vm10 = vcmp.eq.s32.totalorder %v1720_v42, %v77_v37  ;;  %vm159_vm14 = vcmp.eq.s32.totalorder %v1729_v43, %v133_v38 }
  0xd3   :  { %vm276_vm7 = vmor %vm188_vm1, %vm244_vm5  ;;  %vm158_vm5 = vcmp.eq.s32.totalorder %v1720_v42, %v133_v38 }
  0xd4   :  { %vm360_vm6 = vmor %vm1968_vm9, %vm328_vm8  ;;  %vm103_vm9 = vcmp.eq.s32.totalorder %v1729_v43, %v77_v37  ;;  %vm333_vm8 = vcmp.eq.s32.totalorder %v1707_v32, %v309_v39 }
  0xd5   :  { %vm364_vm2 = vmor %vm276_vm7, %vm332_vm12  ;;  %vm246_vm12 = vcmp.eq.s32.totalorder %v1720_v42, %v221_v36 }
  0xd6   :  { %vm1345_vm4 = vmpackc.low %vm364_vm2, %vm360_vm6  ;;  %vm247_vm2 = vcmp.eq.s32.totalorder %v1729_v43, %v221_v36 }
  0xd7   :  { %1346 = vmatmul.msk.bf16.vlgmr.msra.gmra.mxu3 %vm1345_vm4, %v1600_v58  ;;  %vm189_vm3 = vmor %vm101_vm15, %vm157_vm11  ;;  %vm334_vm4 = vcmp.eq.s32.totalorder %v1720_v42, %v309_v39  ;;  %vm105_vm15 = vcmp.eq.s32.totalorder %v1707_v32, %v1941_v28 }
  0xd8   :  { %vm277_vm0 = vmor %vm189_vm3, %vm245_vm13  ;;  %vm104_vm13 = vcmp.eq.s32.totalorder %v1832_v9, %v77_v37 }
  0xd9   :  { %vm190_vm1 = vmor %vm102_vm10, %vm158_vm5  ;;  %vm160_vm10 = vcmp.eq.s32.totalorder %v1832_v9, %v133_v38 }
  0xda   :  { %v136_v41 = vpop.permute.xlu1 %135  ;;  %vm191_vm6 = vmor %vm103_vm9, %vm159_vm14 }
  0xdb   :  { %vm161_vm7 = vcmp.eq.s32.totalorder %v1707_v32, %v136_v41  ;;  %vm2012_vm11 = vmor %vm277_vm0, %vm333_vm8  ;;  %vm162_vm9 = vcmp.eq.s32.totalorder %v1720_v42, %v136_v41  ;;  %vm163_vm14 = vcmp.eq.s32.totalorder %v1729_v43, %v136_v41  ;;  %vm335_vm8 = vcmp.eq.s32.totalorder %v1729_v43, %v309_v39 }
  0xdc   :  { %v2331_v44 = vsel %vm2012_vm11, 4294967295, %v2330_v44  ;;  %vm278_vm3 = vmor %vm190_vm1, %vm246_vm12  ;;  %vm106_vm1 = vcmp.eq.s32.totalorder %v1720_v42, %v1941_v28 }
  0xdd   :  { %vm2018_vm5 = vmor %vm105_vm15, %vm161_vm7  ;;  %vm248_vm15 = vcmp.eq.s32.totalorder %v1832_v9, %v221_v36 }
  0xde   :  { %v2333_v45 = vsel %vm2018_vm5, 4294967295, %v2332_v45  ;;  %vm2024_vm0 = vmor %vm191_vm6, %vm247_vm2  ;;  %vm107_vm6 = vcmp.eq.s32.totalorder %v1729_v43, %v1941_v28  ;;  %vm164_vm2 = vcmp.eq.s32.totalorder %v1832_v9, %v136_v41 }
  0xdf   :  { %vm2031_vm12 = vmor %vm278_vm3, %vm334_vm4  ;;  %vm337_vm4 = vcmp.eq.s32.totalorder %v1707_v32, %v312_v46 }
  0xe0   :  { %v2337_v48 = vsel %vm2031_vm12, 4294967295, %v2336_v48  ;;  %vm192_vm7 = vmor %vm104_vm13, %vm160_vm10  ;;  %vm336_vm13 = vcmp.eq.s32.totalorder %v1832_v9, %v309_v39 }
  0xe1   :  { %vm2038_vm5 = vmor %vm106_vm1, %vm162_vm9  ;;  %vm108_vm1 = vcmp.eq.s32.totalorder %v1832_v9, %v1941_v28 }
  0xe2   :  { %v2339_v50 = vsel %vm2038_vm5, 4294967295, %v2338_v50  ;;  %vm2046_vm3 = vmor %vm107_vm6, %vm163_vm14  ;;  %vm2344_vm14 = vnez %v2333_v45  ;;  %vm338_vm5 = vcmp.eq.s32.totalorder %v1720_v42, %v312_v46 }
  0xe3   :  { %v224_v51 = vpop.permute.xlu1 %223  ;;  %v2341_v53 = vsel %vm2046_vm3, 4294967295, %v2340_v53  ;;  %vm2054_vm9 = vmor %vm2024_vm0, %vm335_vm8  ;;  %vm2347_vm8 = vnez %v2331_v44 }
  0xe4   :  { %vm249_vm10 = vcmp.eq.s32.totalorder %v1707_v32, %v224_v51  ;;  %v2343_v54 = vsel %vm2054_vm9, 4294967295, %v2342_v54  ;;  %vm280_vm11 = vmor %vm192_vm7, %vm248_vm15  ;;  %vm250_vm12 = vcmp.eq.s32.totalorder %v1720_v42, %v224_v51  ;;  %vm251_vm15 = vcmp.eq.s32.totalorder %v1729_v43, %v224_v51 }
  0xe5   :  { %vm281_vm6 = vmor %vm2344_vm14, %vm249_vm10  ;;  %vm2350_vm10 = vnez %v2339_v50 }
  0xe6   :  { %vm2063_vm3 = vmor %vm108_vm1, %vm164_vm2  ;;  %vm339_vm1 = vcmp.eq.s32.totalorder %v1729_v43, %v312_v46 }
  0xe7   :  { %v2346_v56 = vsel %vm2063_vm3, 4294967295, %v2345_v56  ;;  %vm369_vm0 = vmor %vm281_vm6, %vm337_vm4  ;;  %vm2351_vm3 = vnez %v2337_v48  ;;  %vm252_vm6 = vcmp.eq.s32.totalorder %v1832_v9, %v224_v51 }
  0xe8   :  { %vm1323_vm9 = vmpackc.low %vm369_vm0, %vm2347_vm8 }
  0xe9   :  { %vm2070_vm7 = vmor %vm280_vm11, %vm336_vm13  ;;  %1324 = vmatmul.msk.bf16.gmra.mxu0 %vm1323_vm9, %v1600_v58  ;;  %vm2352_vm11 = vnez %v2341_v53  ;;  %vm340_vm9 = vcmp.eq.s32.totalorder %v1832_v9, %v312_v46 }
  0xea   :  { %vm282_vm2 = vmor %vm2350_vm10, %vm250_vm12  ;;  %vm2353_vm12 = vnez %v2343_v54 }
  0xeb   :  { %vm370_vm14 = vmor %vm282_vm2, %vm338_vm5  ;;  %vm2354_vm5 = vnez %v2346_v56  ;;  %vm118_vm2 = vcmp.eq.s32.totalorder %v1720_v42, %v1694_v22 }
  0xec   :  { %vm1331_vm4 = vmpackc.low %vm370_vm14, %vm2351_vm3 }
  0xed   :  { %1332 = vmatmul.msk.bf16.gmra.mxu1 %vm1331_vm4, %v1600_v58  ;;  %vm283_vm13 = vmor %vm2352_vm11, %vm251_vm15  ;;  %vm174_vm15 = vcmp.eq.s32.totalorder %v1720_v42, %v1704_v27  ;;  %vm122_vm4 = vcmp.eq.s32.totalorder %v1720_v42, %v1745_v49 }
  0xee   :  { %vm371_vm8 = vmor %vm283_vm13, %vm339_vm1  ;;  %vm178_vm1 = vcmp.eq.s32.totalorder %v1720_v42, %v1702_v26  ;;  %vm262_vm13 = vcmp.eq.s32.totalorder %v1720_v42, %v1774_v62 }
  0xef   :  { %vm1339_vm10 = vmpackc.low %vm371_vm8, %vm2353_vm12  ;;  %vm266_vm8 = vcmp.eq.s32.totalorder %v1720_v42, %v1713_v40 }
  0xf0   :  { %1340 = vmatmul.msk.bf16.gmra.mxu2 %vm1339_vm10, %v1600_v58  ;;  %vm284_vm3 = vmor %vm2354_vm5, %vm252_vm6  ;;  %vm354_vm10 = vcmp.eq.s32.totalorder %v1720_v42, %v1763_v55 }
  0xf1   :  { %vm372_vm14 = vmor %vm284_vm3, %vm340_vm9  ;;  %vm2355_vm3 = vcmp.eq.s32.totalorder %v1720_v42, %v1796_v5  ;;  %v2364_v42 = vmov 0 }
  0xf2   :  { %vm1347_vm11 = vmpackc.low %vm372_vm14, %vm2070_vm7  ;;  %vm119_vm7 = vcmp.eq.s32.totalorder %v1729_v43, %v1694_v22  ;;  %vm123_vm14 = vcmp.eq.s32.totalorder %v1729_v43, %v1745_v49 }
  0xf3   :  { %1348 = vmatmul.msk.bf16.gmra.mxu3 %vm1347_vm11, %v1600_v58  ;;  %vm206_vm6 = vmor %vm118_vm2, %vm174_vm15  ;;  %vm175_vm2 = vcmp.eq.s32.totalorder %v1729_v43, %v1704_v27  ;;  %vm263_vm11 = vcmp.eq.s32.totalorder %v1729_v43, %v1774_v62 }
  0xf4   :  { %vm210_vm12 = vmor %vm122_vm4, %vm178_vm1  ;;  %vm179_vm4 = vcmp.eq.s32.totalorder %v1729_v43, %v1702_v26 }
  0xf5   :  { %vm294_vm9 = vmor %vm206_vm6, %vm262_vm13  ;;  %vm267_vm6 = vcmp.eq.s32.totalorder %v1729_v43, %v1713_v40 }
  0xf6   :  { %vm298_vm5 = vmor %vm210_vm12, %vm266_vm8 }
  0xf7   :  { %vm2113_vm0 = vmor %vm294_vm9, %vm2355_vm3  ;;  %vm355_vm9 = vcmp.eq.s32.totalorder %v1729_v43, %v1763_v55 }
  0xf8   :  { %v2357_v59 = vsel %vm2113_vm0, 4294967295, %v2356_v59  ;;  %vm2121_vm15 = vmor %vm298_vm5, %vm354_vm10  ;;  %vm2360_vm10 = vnez %v2294_v8  ;;  %vm2361_vm5 = vnez %v2288_v52  ;;  %vm2363_vm0 = vcmp.eq.s32.totalorder %v1729_v43, %v1796_v5  ;;  %v1452_v52 = vld [vmem:[%s2272_s2 + $0x18] sm:$0xff] }
  0xf9   :  { %vm207_vm13 = vmor %vm119_vm7, %vm175_vm2 }
  0xfa   :  { %vm211_vm8 = vmor %vm123_vm14, %vm179_vm4  ;;  %vm2368_vm14 = vnez %v2302_v14  ;;  %vm2369_vm4 = vnez %v2298_v12 }
  0xfb   :  { %vm295_vm12 = vmor %vm207_vm13, %vm263_vm11 }
  0xfc   :  { %vm2362_vm3 = vmpackc.low %vm2360_vm10, %vm2361_vm5  ;;  %vm176_vm10 = vcmp.eq.s32.totalorder %v1832_v9, %v1704_v27  ;;  %vm264_vm5 = vcmp.eq.s32.totalorder %v1832_v9, %v1774_v62  ;;  %v1454_v27 = vld [vmem:[%s2272_s2 + $0x28] sm:$0xff] }
  0xfd   :  { %1334 = vmatmul.msk.bf16.gmra.mxu1 %vm2362_vm3, %v1600_v58  ;;  %vm299_vm1 = vmor %vm211_vm8, %vm267_vm6  ;;  %vm124_vm8 = vcmp.eq.s32.totalorder %v1832_v9, %v1745_v49  ;;  %v1450_v62 = vld [vmem:[%s2272_s2 + $0x8] sm:$0xff] }
  0xfe   :  { %vm2148_vm7 = vmor %vm295_vm12, %vm2363_vm0  ;;  %vm2371_vm0 = vnez %v2310_v19  ;;  %vm180_vm12 = vcmp.eq.s32.totalorder %v1832_v9, %v1702_v26  ;;  %v1455_v26 = vld [vmem:[%s2272_s2 + $0x30] sm:$0xff] }
  0xff   :  { %v2365_v42 = vsel %vm2148_vm7, 4294967295, %v2364_v42  ;;  %vm2152_vm2 = vmor %vm299_vm1, %vm355_vm9  ;;  %vm2372_vm1 = vnez %v2308_v16  ;;  %vm120_vm9 = vcmp.eq.s32.totalorder %v1832_v9, %v1694_v22  ;;  %vm356_vm7 = vcmp.eq.s32.totalorder %v1832_v9, %v1763_v55  ;;  %v1456_v22 = vld [vmem:[%s2272_s2 + $0x38] sm:$0xff]  ;;  %v1451_v55 = vld [vmem:[%s2272_s2 + $0x10] sm:$0xff] }
 0x100   :  { %vm2370_vm11 = vmpackc.low %vm2368_vm14, %vm2369_vm4  ;;  %vm268_vm14 = vcmp.eq.s32.totalorder %v1832_v9, %v1713_v40  ;;  %913 = vmatpush.bf16.msrb.mxu0 %v1456_v22  ;;  %v1453_v40 = vld [vmem:[%s2272_s2 + $0x20] sm:$0xff] }
 0x101   :  { %1342 = vmatmul.msk.bf16.gmra.mxu2 %vm2370_vm11, %v1600_v58  ;;  %vm2373_vm6 = vmpackc.low %vm2371_vm0, %vm2372_vm1  ;;  %vm352_vm11 = vcmp.eq.s32.totalorder %v1832_v9, %v1796_v5  ;;  %vm2374_vm0 = vnez %v2357_v59 }
 0x102   :  { %vm212_vm3 = vmor %vm124_vm8, %vm180_vm12  ;;  %vm2376_vm12 = vnez %v2365_v42 }
 0x103   :  { %1350 = vmatmul.msk.bf16.gmra.mxu3 %vm2373_vm6, %v1600_v58  ;;  %vm208_vm4 = vmor %vm120_vm9, %vm176_vm10 }
 0x104   :  { %vm2375_vm1 = vmpackc.low %vm2121_vm15, %vm2374_vm0  ;;  %914 = vmatpush.bf16.msrb.mxu0 %v1455_v26  ;;  %vm953_vm15 = vcmp.lt.s32.totalorder %v1707_v32, 8 }
 0x105   :  { %vm296_vm6 = vmor %vm208_vm4, %vm264_vm5  ;;  %vm960_vm5 = vcmp.ge.s32.totalorder %v1707_v32, 16 }
 0x106   :  { %vm300_vm13 = vmor %vm212_vm3, %vm268_vm14  ;;  %vm961_vm3 = vcmp.lt.s32.totalorder %v1707_v32, 24 }
 0x107   :  { %vm384_vm8 = vmor %vm296_vm6, %vm352_vm11  ;;  %vm1065_vm11 = vcmask 1041409   ;;  %vm1069_vm6 = vcmask 1043459  }
 0x108   :  { %vm2377_vm9 = vmpackc.low %vm2152_vm2, %vm2376_vm12  ;;  %915 = vmatpush.bf16.msrb.mxu0 %v1454_v27  ;;  %vm957_vm2 = vcmp.lt.s32.totalorder %v1707_v32, 16  ;;  %vm1073_vm12 = vcmask 1045509  }
 0x109   :  { %vm388_vm10 = vmor %vm300_vm13, %vm356_vm7  ;;  %vm956_vm7 = vcmp.ge.s32.totalorder %v1707_v32, 8 }
 0x10a   :  { %vm1351_vm0 = vmpackc.low %vm388_vm10, %vm384_vm8  ;;  %vm1071_vm8 = vcmask 1044484   ;;  %vm1077_vm10 = vcmask 1047559  }
 0x10b   :  { %vm958_vm13 = vmand %vm956_vm7, %vm957_vm2 }
 0x10c   :  { %916 = vmatpush.bf16.msrb.mxu0 %v1453_v40  ;;  %vm962_vm14 = vmand %vm960_vm5, %vm961_vm3 }
 0x10d   :  { %1336 = vmatmul.msk.bf16.gmra.mxu1 %vm2375_vm1, %v1600_v58  ;;  %vm1067_vm1 = vcmask 1042434  }
 0x110   :  { %917 = vmatpush.bf16.msrb.mxu0 %v1452_v52 }
 0x111   :  { %1344 = vmatmul.msk.bf16.gmra.mxu2 %vm2377_vm9, %v1600_v58  ;;  %vm1075_vm9 = vcmask 1046534  }
 0x113   :  { %1352 = vmatmul.msk.bf16.gmra.mxu3 %vm1351_vm0, %v1600_v58 }
 0x114   :  { %918 = vmatpush.bf16.msrb.mxu0 %v1451_v55  ;;  %v1464_v55 = vld [vmem:[#allocation5 + $0x38] sm:$0xff] }
 0x115   :  { %1129 = vmatpush.bf16.msrb.mxu1 %v1464_v55 }
 0x118   :  { %919 = vmatpush.bf16.msrb.mxu0 %v1450_v62 }
 0x11c   :  { %920 = vmatpush.bf16.msrb.mxu0 %v1449_v63  ;;  %v1463_v63 = vld [vmem:[#allocation5 + $0x30] sm:$0xff] }
 0x11d   :  { %1130 = vmatpush.bf16.msrb.mxu1 %v1463_v63 }
 0x123   :  { %v744_v43 = vpop.f32.mrf.mxu2 }
 0x12b   :  { %v746_v49 = vpop.f32.mrf.mxu2 }
 0x134   :  { %v749_v58 = vpop.f32.mrf.mxu2 }
 0x13c   :  { %v751_v0 = vpop.f32.mrf.mxu2 }
 0x14b   :  { %v734_v1 = vpop.f32.mrf.mxu0 }
 0x14d   :  { %v763_v2 = vpop.f32.mrf.mxu1 }
 0x14e   :  { %v764_v7 = vadd.f32 %v763_v2, %v734_v1  ;;  %v1462_v2 = vld [vmem:[#allocation5 + $0x28] sm:$0xff] }
 0x14f   :  { %1131 = vmatpush.bf16.msrb.mxu1 %v1462_v2 }
 0x153   :  { %v736_v4 = vpop.f32.mrf.mxu0 }
 0x155   :  { %v792_v3 = vpop.f32.mrf.mxu2  ;;  %v765_v6 = vpop.f32.mrf.mxu1 }
 0x156   :  { %v766_v8 = vadd.f32 %v765_v6, %v736_v4  ;;  %v793_v10 = vadd.f32 %v792_v3, %v764_v7  ;;  %v1601_v3 = vmov 4294967295  }
 0x157   :  { %v955_v4 = vsel %vm953_vm15, 6, %v1601_v3 }
 0x158   :  { %v959_v7 = vsel %vm958_vm13, 5, %v955_v4 }
 0x15a   :  { %v821_v5 = vpop.f32.mrf.mxu3 }
 0x15b   :  { %v822_v13 = vadd.f32 %v821_v5, %v793_v10  ;;  %v1461_v5 = vld [vmem:[#allocation5 + $0x20] sm:$0xff] }
 0x15c   :  { %1132 = vmatpush.bf16.msrb.mxu1 %v1461_v5 }
 0x15d   :  { %v794_v9 = vpop.f32.mrf.mxu2 }
 0x15e   :  { %v795_v11 = vadd.f32 %v794_v9, %v766_v8 }
 0x162   :  { %v823_v12 = vpop.f32.mrf.mxu3 }
 0x163   :  { %v824_v14 = vadd.f32 %v823_v12, %v795_v11  ;;  %v951_v11 = vshrl.u32 %v64_v31, 7 }
 0x165   :  { %v841_v15 = vpack.c.bf16 %v824_v14, %v822_v13  ;;  %v963_v13 = vsel %vm962_vm14, 4, %v959_v7 }
 0x166   :  { %v739_v18 = vpop.f32.mrf.mxu0  ;;  %vm2241_vm4 = vcmp.le.s32.totalorder %v951_v11, %v963_v13 }
 0x167   :  { %921 = vmatmul.bf16.vlgmr.msrb.gmra.mxu0 %v841_v15 }
 0x16a   :  { %v768_v17 = vpop.f32.mrf.mxu1 }
 0x16b   :  { %v769_v23 = vadd.f32 %v768_v17, %v739_v18 }
 0x16e   :  { %v741_v19 = vpop.f32.mrf.mxu0 }
 0x172   :  { %v770_v20 = vpop.f32.mrf.mxu1 }
 0x173   :  { %v797_v16 = vpop.f32.mrf.mxu2  ;;  %v771_v24 = vadd.f32 %v770_v20, %v741_v19 }
 0x174   :  { %v798_v28 = vadd.f32 %v797_v16, %v769_v23 }
 0x176   :  { %v826_v21 = vpop.f32.mrf.mxu3 }
 0x177   :  { %v827_v34 = vadd.f32 %v826_v21, %v798_v28  ;;  %v1460_v21 = vld [vmem:[#allocation5 + $0x18] sm:$0xff] }
 0x178   :  { %1133 = vmatpush.bf16.msrb.mxu1 %v1460_v21 }
 0x17a   :  { %v773_v25 = vpop.f32.mrf.mxu1 }
 0x17b   :  { %v799_v29 = vpop.f32.mrf.mxu2  ;;  %v774_v41 = vadd.f32 %v773_v25, %v744_v43 }
 0x17c   :  { %v800_v30 = vadd.f32 %v799_v29, %v771_v24 }
 0x17e   :  { %v828_v33 = vpop.f32.mrf.mxu3 }
 0x17f   :  { %v829_v35 = vadd.f32 %v828_v33, %v800_v30 }
 0x181   :  { %v842_v36 = vpack.c.bf16 %v829_v35, %v827_v34 }
 0x182   :  { %v775_v38 = vpop.f32.mrf.mxu1 }
 0x183   :  { %926 = vmatmul.bf16.gmra.mxu0 %v842_v36  ;;  %v776_v44 = vadd.f32 %v775_v38, %v746_v49  ;;  %v1459_v36 = vld [vmem:[#allocation5 + $0x10] sm:$0xff] }
 0x184   :  { %v802_v37 = vpop.f32.mrf.mxu2  ;;  %1134 = vmatpush.bf16.msrb.mxu1 %v1459_v36 }
 0x185   :  { %v803_v45 = vadd.f32 %v802_v37, %v774_v41  ;;  %v1458_v41 = vld [vmem:[#allocation5 + $0x8] sm:$0xff] }
 0x186   :  { %v831_v39 = vpop.f32.mrf.mxu3 }
 0x187   :  { %v832_v51 = vadd.f32 %v831_v39, %v803_v45 }
 0x188   :  { %1135 = vmatpush.bf16.msrb.mxu1 %v1458_v41 }
 0x18a   :  { %v778_v48 = vpop.f32.mrf.mxu1 }
 0x18b   :  { %v779_v60 = vadd.f32 %v778_v48, %v749_v58 }
 0x18c   :  { %v804_v46 = vpop.f32.mrf.mxu2 }
 0x18d   :  { %v805_v47 = vadd.f32 %v804_v46, %v776_v44 }
 0x18e   :  { %v833_v50 = vpop.f32.mrf.mxu3 }
 0x18f   :  { %v834_v53 = vadd.f32 %v833_v50, %v805_v47 }
 0x191   :  { %v843_v54 = vpack.c.bf16 %v834_v53, %v832_v51 }
 0x192   :  { %v780_v59 = vpop.f32.mrf.mxu1 }
 0x193   :  { %931 = vmatmul.bf16.gmra.mxu0 %v843_v54  ;;  %v781_v42 = vadd.f32 %v780_v59, %v751_v0  ;;  %v2231_v0 = vld [vmem:[%s2273_s3] ss:$0 sm:$0xff] }
 0x194   :  { %v807_v56 = vpop.f32.mrf.mxu2 }
 0x195   :  { %v808_v61 = vadd.f32 %v807_v56, %v779_v60  ;;  %v1457_v56 = vld [vmem:[#allocation5] sm:$0xff] }
 0x196   :  { %v836_v57 = vpop.f32.mrf.mxu3  ;;  %1136 = vmatpush.bf16.msrb.mxu1 %v1457_v56 }
 0x197   :  { %v837_v40 = vadd.f32 %v836_v57, %v808_v61 }
 0x19c   :  { %v809_v22 = vpop.f32.mrf.mxu2 }
 0x19d   :  { %v810_v26 = vadd.f32 %v809_v22, %v781_v42 }
 0x19e   :  { %v838_v27 = vpop.f32.mrf.mxu3 }
 0x19f   :  { %v839_v43 = vadd.f32 %v838_v27, %v810_v26 }
 0x1a1   :  { %v844_v49 = vpack.c.bf16 %v839_v43, %v837_v40 }
 0x1a3   :  { %936 = vmatmul.bf16.gmra.mxu0 %v844_v49 }
 0x1e4   :  { %v922_v52 = vpop.f32.mrf.mxu0 }
 0x1e5   :  { %v923_v9 = vadd.f32 %v2231_v0, %v922_v52 }
 0x1e7   :  { %v942_v17 = vmax.f32 %v923_v9, 0.0 }
 0x1e9   :  { %v965_v23 = vsel %vm2241_vm4, %v942_v17, 0.0 }
 0x1ea   :  { %v973_v34 = vrot.slane %v965_v23, 4 }
 0x1ec   :  { %v924_v62 = vpop.f32.mrf.mxu0  ;;  %v974_v46 = vmax.f32 %v965_v23, %v973_v34 }
 0x1ed   :  { %v925_v6 = vadd.f32 %v2231_v0, %v924_v62 }
 0x1ee   :  { %v975_v60 = vrot.slane %v974_v46, 2 }
 0x1ef   :  { %v943_v14 = vmax.f32 %v925_v6, 0.0 }
 0x1f0   :  { %v976_v49 = vmax.f32 %v974_v46, %v975_v60  ;;  %v1513_v60 = vld [vmem:[%s2275_s5] ss:$0 sm:$0xff] }
 0x1f1   :  { %v966_v19 = vsel %vm2241_vm4, %v943_v14, 0.0 }
 0x1f2   :  { %v979_v25 = vrot.slane %v966_v19, 4  ;;  %v977_v5 = vrot.slane %v976_v49, 1 }
 0x1f4   :  { %v980_v39 = vmax.f32 %v966_v19, %v979_v25 }
 0x1f6   :  { %v981_v51 = vrot.slane %v980_v39, 2 }
 0x1f8   :  { %v982_v26 = vmax.f32 %v980_v39, %v981_v51 }
 0x1fa   :  { %v983_v63 = vrot.slane %v982_v26, 1 }
 0x200   :  { %v927_v1 = vpop.f32.mrf.mxu0 }
 0x201   :  { %v928_v8 = vadd.f32 %v2231_v0, %v927_v1 }
 0x203   :  { %v944_v32 = vmax.f32 %v928_v8, 0.0 }
 0x205   :  { %v967_v31 = vsel %vm2241_vm4, %v944_v32, 0.0 }
 0x206   :  { %v985_v30 = vrot.slane %v967_v31, 4 }
 0x208   :  { %v929_v58 = vpop.f32.mrf.mxu0  ;;  %v986_v44 = vmax.f32 %v967_v31, %v985_v30 }
 0x209   :  { %v930_v10 = vadd.f32 %v2231_v0, %v929_v58 }
 0x20a   :  { %v987_v57 = vrot.slane %v986_v44, 2 }
 0x20b   :  { %v945_v18 = vmax.f32 %v930_v10, 0.0  ;;  %v984_v10 = vmax.f32 %v982_v26, %v983_v63 }
 0x20c   :  { %v988_v40 = vmax.f32 %v986_v44, %v987_v57 }
 0x20d   :  { %v968_v24 = vsel %vm2241_vm4, %v945_v18, 0.0  ;;  %v1022_v21 = vpack.c.bf16 %v984_v10, %v984_v10 }
 0x20e   :  { %v991_v35 = vrot.slane %v968_v24, 4  ;;  %v989_v3 = vrot.slane %v988_v40, 1 }
 0x20f   :  { %v1058_v30 = vunpack.c.l.b16 %v1022_v21 }
 0x210   :  { %v932_v12 = vpop.f32.mrf.mxu0  ;;  %v992_v47 = vmax.f32 %v968_v24, %v991_v35  ;;  %v990_v13 = vmax.f32 %v988_v40, %v989_v3 }
 0x211   :  { %v933_v15 = vadd.f32 %v2231_v0, %v932_v12 }
 0x212   :  { %v993_v42 = vrot.slane %v992_v47, 2  ;;  %v1023_v31 = vpack.c.bf16 %v990_v13, %v990_v13 }
 0x213   :  { %v946_v16 = vmax.f32 %v933_v15, 0.0  ;;  %v978_v15 = vmax.f32 %v976_v49, %v977_v5 }
 0x214   :  { %v994_v52 = vmax.f32 %v992_v47, %v993_v42  ;;  %v1059_v20 = vunpack.c.l.b16 %v1023_v31 }
 0x215   :  { %v969_v28 = vsel %vm2241_vm4, %v946_v16, 0.0  ;;  %v1021_v24 = vpack.c.bf16 %v978_v15, %v978_v15 }
 0x216   :  { %v997_v37 = vrot.slane %v969_v28, 4  ;;  %v995_v6 = vrot.slane %v994_v52, 1 }
 0x217   :  { %v1057_v36 = vunpack.c.l.b16 %v1021_v24 }
 0x218   :  { %v934_v29 = vpop.f32.mrf.mxu0  ;;  %v998_v50 = vmax.f32 %v969_v28, %v997_v37  ;;  %v996_v32 = vmax.f32 %v994_v52, %v995_v6 }
 0x219   :  { %v935_v33 = vadd.f32 %v2231_v0, %v934_v29  ;;  %v1066_v41 = vsel %vm1065_vm11, %v1058_v30, %v1057_v36 }
 0x21a   :  { %v999_v61 = vrot.slane %v998_v50, 2  ;;  %v1024_v25 = vpack.c.bf16 %v996_v32, %v996_v32  ;;  %v1068_v46 = vsel %vm1067_vm1, %v1059_v20, %v1066_v41 }
 0x21b   :  { %v947_v38 = vmax.f32 %v935_v33, 0.0 }
 0x21c   :  { %v1000_v62 = vmax.f32 %v998_v50, %v999_v61  ;;  %v1060_v37 = vunpack.c.l.b16 %v1024_v25 }
 0x21d   :  { %v970_v45 = vsel %vm2241_vm4, %v947_v38, 0.0 }
 0x21e   :  { %v1003_v48 = vrot.slane %v970_v45, 4  ;;  %v1001_v8 = vrot.slane %v1000_v62, 1  ;;  %v1070_v50 = vsel %vm1069_vm6, %v1060_v37, %v1068_v46 }
 0x220   :  { %v1004_v53 = vmax.f32 %v970_v45, %v1003_v48  ;;  %v937_v54 = vpop.f32.mrf.mxu0  ;;  %v1002_v16 = vmax.f32 %v1000_v62, %v1001_v8 }
 0x221   :  { %v938_v59 = vadd.f32 %v2231_v0, %v937_v54 }
 0x222   :  { %v1005_v27 = vrot.slane %v1004_v53, 2  ;;  %v1025_v29 = vpack.c.bf16 %v1002_v16, %v1002_v16 }
 0x223   :  { %v948_v22 = vmax.f32 %v938_v59, 0.0 }
 0x224   :  { %v1006_v1 = vmax.f32 %v1004_v53, %v1005_v27  ;;  %v1061_v39 = vunpack.c.l.b16 %v1025_v29 }
 0x225   :  { %v971_v43 = vsel %vm2241_vm4, %v948_v22, 0.0 }
 0x226   :  { %v1009_v55 = vrot.slane %v971_v43, 4  ;;  %v1007_v11 = vrot.slane %v1006_v1, 1  ;;  %v1072_v51 = vsel %vm1071_vm8, %v1061_v39, %v1070_v50 }
 0x228   :  { %v1010_v2 = vmax.f32 %v971_v43, %v1009_v55  ;;  %v939_v58 = vpop.f32.mrf.mxu0  ;;  %v1008_v19 = vmax.f32 %v1006_v1, %v1007_v11 }
 0x229   :  { %v940_v4 = vadd.f32 %v2231_v0, %v939_v58 }
 0x22a   :  { %v1011_v7 = vrot.slane %v1010_v2, 2  ;;  %v1026_v33 = vpack.c.bf16 %v1008_v19, %v1008_v19 }
 0x22b   :  { %v949_v9 = vmax.f32 %v940_v4, 0.0 }
 0x22c   :  { %v1012_v12 = vmax.f32 %v1010_v2, %v1011_v7  ;;  %v1062_v44 = vunpack.c.l.b16 %v1026_v33 }
 0x22d   :  { %v972_v14 = vsel %vm2241_vm4, %v949_v9, 0.0 }
 0x22e   :  { %v1013_v17 = vrot.slane %v1012_v12, 1  ;;  %v1015_v18 = vrot.slane %v972_v14, 4  ;;  %v1074_v54 = vsel %vm1073_vm12, %v1062_v44, %v1072_v51 }
 0x230   :  { %v1016_v0 = vmax.f32 %v972_v14, %v1015_v18  ;;  %v1014_v23 = vmax.f32 %v1012_v12, %v1013_v17 }
 0x232   :  { %v1017_v28 = vrot.slane %v1016_v0, 2  ;;  %v1027_v35 = vpack.c.bf16 %v1014_v23, %v1014_v23 }
 0x234   :  { %v1018_v34 = vmax.f32 %v1016_v0, %v1017_v28  ;;  %v1063_v47 = vunpack.c.l.b16 %v1027_v35 }
 0x236   :  { %v1019_v38 = vrot.slane %v1018_v34, 1  ;;  %v1076_v56 = vsel %vm1075_vm9, %v1063_v47, %v1074_v54 }
 0x238   :  { %v1020_v45 = vmax.f32 %v1018_v34, %v1019_v38 }
 0x23a   :  { %v1028_v48 = vpack.c.bf16 %v1020_v45, %v1020_v45 }
 0x23c   :  { %v1064_v53 = vunpack.c.l.b16 %v1028_v48 }
 0x23e   :  { %v1078_v57 = vsel %vm1077_vm10, %v1064_v53, %v1076_v56 }
 0x23f   :  { %v1079_v59 = vpack.c.b16 %v1078_v57, %v1078_v57 }
 0x241   :  { %1137 = vmatmul.bf16.vlgmr.msrb.gmra.mxu1 %v1079_v59 }
 0x2be   :  { %v1138_v42 = vpop.f32.mrf.mxu1 }
 0x2bf   :  { %v1139_v61 = vadd.f32 %v1513_v60, %v1138_v42 }
 0x2c1   :  { %1142 = vst [vmem:[#allocation7] sm:$0xff] %v1139_v61 }
 0x2c2   :  { %1153 = dma.vmem_to_hbm [thread:$0]  %s1149_s15, 128, %s1151_s18, [#allocation4]  }
 0x2c6   :  { %v1140_v22 = vpop.f32.mrf.mxu1 }
 0x2c7   :  { %1590 = dma.done.wait [#allocation4], 128  }
 0x2c8   :  { %1591 = vsyncadd [#allocation4], 4294967168 }
 0x2c9   :  { %1158 = vsyncpa [#allocation3], 1 }
 0x2ca   :  { %1159 = vsyncpa [#allocation6], 1 }
 0x2cb   :  { %1160 = vsyncpa [#allocation4], 1 }

</bundles_post_ra>
